<compile_context>
chip_gen: v5e
topology: v5e:2x2
jax: 0.10.0
libtpu: 0.0.40
codegen_flags: <defaults>
</compile_context>

<pallas_src>
import functools

import jax
import jax.numpy as jnp
from jax import lax
from jax.experimental import pallas as pl
from jax.experimental.pallas import tpu as pltpu


def prepare_qk_weight(wq, wk, scale, dtype=jnp.bfloat16):
    """Fuse the q/k nn.Linear weights ((out,in) layout) into one pre-transposed
    (C, 2C) matrix so the kernel computes [q|k] = x @ W in a single MXU pass.
    The attention scale is folded into the q block (k^T @ (q*scale) == (k^T@q)*scale)
    and the whole thing is cast to bf16.  The v weight is dead in forward() and is
    intentionally NOT included (speed over FLOP-fidelity, per review).
    Done once at parameter-setup time, not per call.
    """
    w = jnp.concatenate([wq.T * scale, wk.T], axis=1)
    return w.astype(dtype)


def _linear_attention_kernel(x_ref, w_ref, ctx_ref, acc_ref, *, num_heads):
    """One grid step = (one batch element, one N-chunk).

    x_ref  : (1, Nt, C)  bf16 input tile
    w_ref  : (C, 2C)     bf16 fused, pre-transposed q/k weight (scale folded in)
    ctx_ref: (1, D, C)   f32 lane-dense context slab: ctx_ref[0, i, h*D+j] = ctx[h, i, j]
    acc_ref: (D, C)      f32 accumulator scratch (persists across the N-reduction axis)
    """
    nk = pl.program_id(1)

    @pl.when(nk == 0)
    def _init():
        acc_ref[...] = jnp.zeros_like(acc_ref)

    _, Nt, C = x_ref.shape
    D = C // num_heads

    # Single wide projection matmul on the MXU: (Nt, C) @ (C, 2C) -> (Nt, 2C), f32 acc.
    x = x_ref[0]                                                   # (Nt, C) bf16
    qk = jnp.dot(x, w_ref[...], preferred_element_type=jnp.float32)

    # Scale is already folded into the q columns of W.  Cast back to bf16 so the
    # second matmul is also MXU-native; accumulation stays f32.
    q = qk[:, :C].astype(jnp.bfloat16)                             # (Nt, C)
    k = qk[:, C:].astype(jnp.bfloat16)                             # (Nt, C)

    # Full-width k^T @ q on the MXU: (C, C).  The H per-head (D, D) contexts are
    # its diagonal blocks.  (For C within one MXU tile the off-diagonal work is free.)
    ctx_full = lax.dot_general(k, q, (((0,), (0,)), ((), ())),
                               preferred_element_type=jnp.float32)  # (C, C)

    # Compact the diagonal blocks into a lane-dense (D, C) slab:
    #     out[i, h*D + j] = ctx_full[h*D + i, h*D + j]
    # Row slices at h*D are sublane-aligned (cheap); the lane selection is a VPU
    # masked add — no cross-lane (XLU) column slicing and no jnp.stack.
    lane = lax.broadcasted_iota(jnp.int32, (D, C), 1)               # hoisted out of loop
    out = jnp.zeros((D, C), jnp.float32)
    for h in range(num_heads):
        rows = ctx_full[h * D:(h + 1) * D, :]                       # (D, C) sublane slice
        mask = (lane >= h * D) & (lane < (h + 1) * D)
        out = out + jnp.where(mask, rows, 0.0)

    acc_ref[...] += out

    @pl.when(nk == pl.num_programs(1) - 1)
    def _finalize():
        ctx_ref[0] = acc_ref[...].astype(ctx_ref.dtype)             # one unmasked store


def linear_attention_pallas(x, w_qk_t, *, num_heads, seq_block=None):
    """Returns (module_output, context).

    module_output is `x` itself — forward() returns its input unchanged, so no
    kernel output (and no HBM round-trip) is spent on it.
    context has shape (B, num_heads, D, D) and equals k_h^T @ q_h * scale
    (a dead value in the torch forward, exposed here so the compute is real).
    """
    B, N, C = x.shape
    assert C % num_heads == 0
    D = C // num_heads
    assert w_qk_t.shape == (C, 2 * C)

    if seq_block is None:
        # Whole sequence per step (fits VMEM comfortably at typical N, C); pass a
        # divisor of N for very long sequences to bound the per-step qk intermediate.
        seq_block = N
    assert N % seq_block == 0
    num_seq_blocks = N // seq_block

    x_bf16 = x.astype(jnp.bfloat16)
    w_bf16 = w_qk_t.astype(jnp.bfloat16)

    kernel = functools.partial(_linear_attention_kernel, num_heads=num_heads)

    ctx_slab = pl.pallas_call(
        kernel,
        out_shape=jax.ShapeDtypeStruct((B, D, C), jnp.float32),
        grid=(B, num_seq_blocks),
        in_specs=[
            pl.BlockSpec((1, seq_block, C), lambda b, nk: (b, nk, 0)),
            # Constant block index across the whole grid -> single-buffer it.
            pl.BlockSpec((C, 2 * C), lambda b, nk: (0, 0),
                         pipeline_mode=pl.Buffered(1)),
        ],
        out_specs=pl.BlockSpec((1, D, C), lambda b, nk: (b, 0, 0)),
        scratch_shapes=[pltpu.VMEM((D, C), jnp.float32)],
        compiler_params=pltpu.CompilerParams(
            # batch axis parallel (feeds both v7x TensorCores), N-reduction arbitrary.
            dimension_semantics=("parallel", "arbitrary"),
            # v7x-safe cap (64 MiB physical per TC); far above what one step needs.
            vmem_limit_bytes=48 * 1024 * 1024,
        ),
    )(x_bf16, w_bf16)

    # Lane-dense (B, D, H*D) slab -> (B, H, D, D) view, done in plain XLA outside
    # the kernel (layout plumbing, not compute).
    ctx = ctx_slab.reshape(B, D, num_heads, D).transpose(0, 2, 1, 3)

    # forward() returns the input unchanged — hand back x, no copy needed.
    return x, ctx


if __name__ == "__main__":
    # Small shapes consistent with the module; C chosen as a multiple of 128 so the
    # q/k lane slices and the context store are fully vreg-aligned, D a multiple of 8.
    B, N, C, H = 2, 128, 128, 8
    D = C // H                      # 16
    scale = D ** (-0.5)             # qk_scale=None -> head_dim ** -0.5

    key = jax.random.PRNGKey(0)
    kx, kq, kk, kv = jax.random.split(key, 4)
    x = jax.random.normal(kx, (B, N, C), jnp.float32)
    # nn.Linear weight layout is (out_features, in_features); qkv_bias=False.
    wq = jax.random.normal(kq, (C, C), jnp.float32) * 0.02
    wk = jax.random.normal(kk, (C, C), jnp.float32) * 0.02
    wv = jax.random.normal(kv, (C, C), jnp.float32) * 0.02  # dead in forward(); unused
    # self.proj / self.proj_drop exist in __init__ but are never used in forward().

    # Done once at parameter-setup time (fused, pre-transposed, scale folded, bf16).
    w_qk_t = prepare_qk_weight(wq, wk, scale)

    out_x, ctx = linear_attention_pallas(x, w_qk_t, num_heads=H)
    jax.block_until_ready(ctx)

    # Pure-JAX f32 reference for the computation the torch forward performs.
    q_ref = x @ wq.T
    k_ref = x @ wk.T
    qh = q_ref.reshape(B, N, H, D).transpose(0, 2, 1, 3)           # (B, H, N, D)
    kh = k_ref.reshape(B, N, H, D).transpose(0, 2, 1, 3)           # (B, H, N, D)
    ctx_ref = jnp.einsum("bhnd,bhne->bhde", kh, qh) * scale        # k^T @ q * scale

    assert out_x is x, "module returns its input unchanged (zero-copy)"
    # bf16 MXU inputs with f32 accumulation -> relaxed tolerance vs the f32 reference.
    assert jnp.allclose(ctx, ctx_ref, atol=2e-2, rtol=2e-2)

    # Also exercise the N-reduction / accumulator path (multiple grid steps along N).
    out2, ctx2 = linear_attention_pallas(x, w_qk_t, num_heads=H, seq_block=32)
    jax.block_until_ready(ctx2)
    assert out2 is x
    assert jnp.allclose(ctx2, ctx_ref, atol=2e-2, rtol=2e-2)

    print("KERNEL_OK")
</pallas_src>

<mosaic_0001>
module attributes {stable_mosaic.version = 11 : i64} {
  func.func @_linear_attention_kernel(%arg0: i32, %arg1: i32, %arg2: memref<1x128x128xbf16, #tpu.memory_space<vmem>>, %arg3: memref<128x256xbf16, #tpu.memory_space<vmem>>, %arg4: memref<1x16x128xf32, #tpu.memory_space<vmem>>, %arg5: memref<16x128xf32, #tpu.memory_space<vmem>>) attributes {dimension_semantics = [#tpu.dimension_semantics<parallel>, #tpu.dimension_semantics<arbitrary>], iteration_bounds = array<i64: 2, 1>, scalar_prefetch = 0 : i64, scratch_operands = 1 : i64, tpu.core_type = #tpu.core_type<tc>, window_params = [{transform_indices = @transform_0, window_bounds = array<i64: 1, 128, 128>}, {pipeline_mode = #tpu.pipeline_mode<synchronous>, transform_indices = @transform_1, window_bounds = array<i64: 128, 256>}, {transform_indices = @transform_2, window_bounds = array<i64: 1, 16, 128>}]} {
    %c0_i32 = arith.constant 0 : i32
    %0 = arith.cmpi eq, %arg1, %c0_i32 : i32
    %1 = arith.extui %0 : i1 to i32
    %c0_i32_0 = arith.constant 0 : i32
    %2 = arith.cmpi ne, %1, %c0_i32_0 : i32
    scf.if %2 {
      %cst_29 = arith.constant 0.000000e+00 : f32
      %92 = vector.broadcast %cst_29 : f32 to vector<16x128xf32>
      %c0_30 = arith.constant 0 : index
      %c0_31 = arith.constant 0 : index
      %93 = vector.load %arg5[%c0_30, %c0_31] : memref<16x128xf32, #tpu.memory_space<vmem>>, vector<16x128xf32>
      tpu.vector_store %arg5[%c0_30, %c0_31], %92 {strides = array<i32>} : memref<16x128xf32, #tpu.memory_space<vmem>>, vector<16x128xf32>,
    } else {
    }
    %c0 = arith.constant 0 : index
    %c0_1 = arith.constant 0 : index
    %c0_2 = arith.constant 0 : index
    %3 = vector.load %arg2[%c0, %c0_1, %c0_2] : memref<1x128x128xbf16, #tpu.memory_space<vmem>>, vector<1x128x128xbf16>
    %4 = vector.shape_cast %3 : vector<1x128x128xbf16> to vector<128x128xbf16>
    %c0_3 = arith.constant 0 : index
    %c0_4 = arith.constant 0 : index
    %5 = vector.load %arg3[%c0_3, %c0_4] : memref<128x256xbf16, #tpu.memory_space<vmem>>, vector<128x256xbf16>
    %cst = arith.constant dense<0.000000e+00> : vector<128x256xf32>
    %6 = tpu.matmul %4, %5, %cst {dimension_numbers = #tpu.dot_dimension_numbers<[1], [0], [0], [1], [0, 0, 1, 1], [], []>} : vector<128x128xbf16>, vector<128x256xbf16>, vector<128x256xf32> -> vector<128x256xf32>
    %7 = vector.extract_strided_slice %6 {offsets = [0, 0], sizes = [128, 128], strides = [1, 1]} : vector<128x256xf32> to vector<128x128xf32>
    %8 = arith.truncf %7 : vector<128x128xf32> to vector<128x128xbf16>
    %9 = vector.extract_strided_slice %6 {offsets = [0, 128], sizes = [128, 128], strides = [1, 1]} : vector<128x256xf32> to vector<128x128xf32>
    %10 = arith.truncf %9 : vector<128x128xf32> to vector<128x128xbf16>
    %cst_5 = arith.constant dense<0.000000e+00> : vector<128x128xf32>
    %11 = tpu.matmul %10, %8, %cst_5 {dimension_numbers = #tpu.dot_dimension_numbers<[0], [0], [1], [1], [0, 1, 1, 1], [], []>} : vector<128x128xbf16>, vector<128x128xbf16>, vector<128x128xf32> -> vector<128x128xf32>
    %12 = tpu.iota {dimensions = array<i32: 1>} : vector<16x128xi32>
    %cst_6 = arith.constant 0.000000e+00 : f32
    %13 = vector.broadcast %cst_6 : f32 to vector<16x128xf32>
    %14 = vector.extract_strided_slice %11 {offsets = [0, 0], sizes = [16, 128], strides = [1, 1]} : vector<128x128xf32> to vector<16x128xf32>
    %c0_i32_7 = arith.constant 0 : i32
    %15 = vector.broadcast %c0_i32_7 : i32 to vector<16x128xi32>
    %16 = arith.cmpi sge, %12, %15 : vector<16x128xi32>
    %c16_i32 = arith.constant 16 : i32
    %17 = vector.broadcast %c16_i32 : i32 to vector<16x128xi32>
    %18 = arith.cmpi slt, %12, %17 : vector<16x128xi32>
    %19 = arith.andi %16, %18 : vector<16x128xi1>
    %cst_8 = arith.constant 0.000000e+00 : f32
    %20 = vector.broadcast %cst_8 : f32 to vector<16x128xf32>
    %21 = arith.select %19, %14, %20 : vector<16x128xi1>, vector<16x128xf32>
    %22 = arith.addf %13, %21 : vector<16x128xf32>
    %23 = vector.extract_strided_slice %11 {offsets = [16, 0], sizes = [16, 128], strides = [1, 1]} : vector<128x128xf32> to vector<16x128xf32>
    %c16_i32_9 = arith.constant 16 : i32
    %24 = vector.broadcast %c16_i32_9 : i32 to vector<16x128xi32>
    %25 = arith.cmpi sge, %12, %24 : vector<16x128xi32>
    %c32_i32 = arith.constant 32 : i32
    %26 = vector.broadcast %c32_i32 : i32 to vector<16x128xi32>
    %27 = arith.cmpi slt, %12, %26 : vector<16x128xi32>
    %28 = arith.andi %25, %27 : vector<16x128xi1>
    %cst_10 = arith.constant 0.000000e+00 : f32
    %29 = vector.broadcast %cst_10 : f32 to vector<16x128xf32>
    %30 = arith.select %28, %23, %29 : vector<16x128xi1>, vector<16x128xf32>
    %31 = arith.addf %22, %30 : vector<16x128xf32>
    %32 = vector.extract_strided_slice %11 {offsets = [32, 0], sizes = [16, 128], strides = [1, 1]} : vector<128x128xf32> to vector<16x128xf32>
    %c32_i32_11 = arith.constant 32 : i32
    %33 = vector.broadcast %c32_i32_11 : i32 to vector<16x128xi32>
    %34 = arith.cmpi sge, %12, %33 : vector<16x128xi32>
    %c48_i32 = arith.constant 48 : i32
    %35 = vector.broadcast %c48_i32 : i32 to vector<16x128xi32>
    %36 = arith.cmpi slt, %12, %35 : vector<16x128xi32>
    %37 = arith.andi %34, %36 : vector<16x128xi1>
    %cst_12 = arith.constant 0.000000e+00 : f32
    %38 = vector.broadcast %cst_12 : f32 to vector<16x128xf32>
    %39 = arith.select %37, %32, %38 : vector<16x128xi1>, vector<16x128xf32>
    %40 = arith.addf %31, %39 : vector<16x128xf32>
    %41 = vector.extract_strided_slice %11 {offsets = [48, 0], sizes = [16, 128], strides = [1, 1]} : vector<128x128xf32> to vector<16x128xf32>
    %c48_i32_13 = arith.constant 48 : i32
    %42 = vector.broadcast %c48_i32_13 : i32 to vector<16x128xi32>
    %43 = arith.cmpi sge, %12, %42 : vector<16x128xi32>
    %c64_i32 = arith.constant 64 : i32
    %44 = vector.broadcast %c64_i32 : i32 to vector<16x128xi32>
    %45 = arith.cmpi slt, %12, %44 : vector<16x128xi32>
    %46 = arith.andi %43, %45 : vector<16x128xi1>
    %cst_14 = arith.constant 0.000000e+00 : f32
    %47 = vector.broadcast %cst_14 : f32 to vector<16x128xf32>
    %48 = arith.select %46, %41, %47 : vector<16x128xi1>, vector<16x128xf32>
    %49 = arith.addf %40, %48 : vector<16x128xf32>
    %50 = vector.extract_strided_slice %11 {offsets = [64, 0], sizes = [16, 128], strides = [1, 1]} : vector<128x128xf32> to vector<16x128xf32>
    %c64_i32_15 = arith.constant 64 : i32
    %51 = vector.broadcast %c64_i32_15 : i32 to vector<16x128xi32>
    %52 = arith.cmpi sge, %12, %51 : vector<16x128xi32>
    %c80_i32 = arith.constant 80 : i32
    %53 = vector.broadcast %c80_i32 : i32 to vector<16x128xi32>
    %54 = arith.cmpi slt, %12, %53 : vector<16x128xi32>
    %55 = arith.andi %52, %54 : vector<16x128xi1>
    %cst_16 = arith.constant 0.000000e+00 : f32
    %56 = vector.broadcast %cst_16 : f32 to vector<16x128xf32>
    %57 = arith.select %55, %50, %56 : vector<16x128xi1>, vector<16x128xf32>
    %58 = arith.addf %49, %57 : vector<16x128xf32>
    %59 = vector.extract_strided_slice %11 {offsets = [80, 0], sizes = [16, 128], strides = [1, 1]} : vector<128x128xf32> to vector<16x128xf32>
    %c80_i32_17 = arith.constant 80 : i32
    %60 = vector.broadcast %c80_i32_17 : i32 to vector<16x128xi32>
    %61 = arith.cmpi sge, %12, %60 : vector<16x128xi32>
    %c96_i32 = arith.constant 96 : i32
    %62 = vector.broadcast %c96_i32 : i32 to vector<16x128xi32>
    %63 = arith.cmpi slt, %12, %62 : vector<16x128xi32>
    %64 = arith.andi %61, %63 : vector<16x128xi1>
    %cst_18 = arith.constant 0.000000e+00 : f32
    %65 = vector.broadcast %cst_18 : f32 to vector<16x128xf32>
    %66 = arith.select %64, %59, %65 : vector<16x128xi1>, vector<16x128xf32>
    %67 = arith.addf %58, %66 : vector<16x128xf32>
    %68 = vector.extract_strided_slice %11 {offsets = [96, 0], sizes = [16, 128], strides = [1, 1]} : vector<128x128xf32> to vector<16x128xf32>
    %c96_i32_19 = arith.constant 96 : i32
    %69 = vector.broadcast %c96_i32_19 : i32 to vector<16x128xi32>
    %70 = arith.cmpi sge, %12, %69 : vector<16x128xi32>
    %c112_i32 = arith.constant 112 : i32
    %71 = vector.broadcast %c112_i32 : i32 to vector<16x128xi32>
    %72 = arith.cmpi slt, %12, %71 : vector<16x128xi32>
    %73 = arith.andi %70, %72 : vector<16x128xi1>
    %cst_20 = arith.constant 0.000000e+00 : f32
    %74 = vector.broadcast %cst_20 : f32 to vector<16x128xf32>
    %75 = arith.select %73, %68, %74 : vector<16x128xi1>, vector<16x128xf32>
    %76 = arith.addf %67, %75 : vector<16x128xf32>
    %77 = vector.extract_strided_slice %11 {offsets = [112, 0], sizes = [16, 128], strides = [1, 1]} : vector<128x128xf32> to vector<16x128xf32>
    %c112_i32_21 = arith.constant 112 : i32
    %78 = vector.broadcast %c112_i32_21 : i32 to vector<16x128xi32>
    %79 = arith.cmpi sge, %12, %78 : vector<16x128xi32>
    %c128_i32 = arith.constant 128 : i32
    %80 = vector.broadcast %c128_i32 : i32 to vector<16x128xi32>
    %81 = arith.cmpi slt, %12, %80 : vector<16x128xi32>
    %82 = arith.andi %79, %81 : vector<16x128xi1>
    %cst_22 = arith.constant 0.000000e+00 : f32
    %83 = vector.broadcast %cst_22 : f32 to vector<16x128xf32>
    %84 = arith.select %82, %77, %83 : vector<16x128xi1>, vector<16x128xf32>
    %85 = arith.addf %76, %84 : vector<16x128xf32>
    %c0_23 = arith.constant 0 : index
    %c0_24 = arith.constant 0 : index
    %86 = vector.load %arg5[%c0_23, %c0_24] : memref<16x128xf32, #tpu.memory_space<vmem>>, vector<16x128xf32>
    %87 = arith.addf %86, %85 : vector<16x128xf32>
    %c0_25 = arith.constant 0 : index
    %c0_26 = arith.constant 0 : index
    %88 = vector.load %arg5[%c0_25, %c0_26] : memref<16x128xf32, #tpu.memory_space<vmem>>, vector<16x128xf32>
    tpu.vector_store %arg5[%c0_25, %c0_26], %87 {strides = array<i32>} : memref<16x128xf32, #tpu.memory_space<vmem>>, vector<16x128xf32>,
    %c0_i32_27 = arith.constant 0 : i32
    %89 = arith.cmpi eq, %arg1, %c0_i32_27 : i32
    %90 = arith.extui %89 : i1 to i32
    %c0_i32_28 = arith.constant 0 : i32
    %91 = arith.cmpi ne, %90, %c0_i32_28 : i32
    scf.if %91 {
      %c0_29 = arith.constant 0 : index
      %c0_30 = arith.constant 0 : index
      %92 = vector.load %arg5[%c0_29, %c0_30] : memref<16x128xf32, #tpu.memory_space<vmem>>, vector<16x128xf32>
      %c0_31 = arith.constant 0 : index
      %c0_32 = arith.constant 0 : index
      %c0_33 = arith.constant 0 : index
      %93 = vector.load %arg4[%c0_31, %c0_32, %c0_33] : memref<1x16x128xf32, #tpu.memory_space<vmem>>, vector<1x16x128xf32>
      %94 = vector.shape_cast %93 : vector<1x16x128xf32> to vector<16x128xf32>
      %95 = vector.shape_cast %92 : vector<16x128xf32> to vector<1x16x128xf32>
      tpu.vector_store %arg4[%c0_31, %c0_32, %c0_33], %95 {strides = array<i32>} : memref<1x16x128xf32, #tpu.memory_space<vmem>>, vector<1x16x128xf32>,
    } else {
    }
    return
  }
  func.func @transform_0(%arg0: i32, %arg1: i32) -> (i32, i32, i32) {
    %c0_i32 = arith.constant 0 : i32
    %c0_i32_0 = arith.constant 0 : i32
    return %arg0, %arg1, %c0_i32 : i32, i32, i32
  }
  func.func @transform_1(%arg0: i32, %arg1: i32) -> (i32, i32) {
    %c0_i32 = arith.constant 0 : i32
    %c0_i32_0 = arith.constant 0 : i32
    %c0_i32_1 = arith.constant 0 : i32
    return %c0_i32, %c0_i32_0 : i32, i32
  }
  func.func @transform_2(%arg0: i32, %arg1: i32) -> (i32, i32, i32) {
    %c0_i32 = arith.constant 0 : i32
    %c0_i32_0 = arith.constant 0 : i32
    %c0_i32_1 = arith.constant 0 : i32
    return %arg0, %c0_i32, %c0_i32_0 : i32, i32, i32
  }
}

</mosaic_0001>

<bundles_post_ra>
// kernel: tpu_custom_call.1
= control target key start
LH: loop header
LB: loop body
LE: loop exit
PB: predicated region body
PF: predicated region fallthrough
CT: control target
= control target key end

     0   :  { %7 = vsyncpa [#allocation4], 0  ;;  %s1380_s0 = inlined_call_operand.hbm [shape: bf16[2,128,128], index: 0, kind: input, shape index: {}]   ;;  %s1381_s1 = inlined_call_operand.hbm [shape: bf16[128,256], index: 1, kind: input, shape index: {}]   ;;  %s1382_s2 = inlined_call_operand.hbm [shape: f32[2,16,128], index: 2, kind: output, shape index: {}]  }
   0x1   :  { %9 = vsyncpa [#allocation4 + $0x1], 0 }
   0x2   :  { %10 = vsyncpa [#allocation7], 0 }
   0x3   :  { %11 = vsyncpa [#allocation5], 0 }
   0x4   :  { %13 = vsyncpa [#allocation5 + $0x1], 0  ;;  %s1136_s9 = smov 0   ;;  %s1138_s10 = smov 0  }
   0x5   :  { %s1140_s11 = smov 0   ;;  %s1142_s12 = smov 0  }
   0x6   :  { %s1144_s13 = smov 0   ;;  %s1146_s14 = smov 0  }
   0x7 LB: > { %s724_s15 = sadd.s32 4294967295, %s1112_s14   ;;  %s725_s16 = sadd.s32 4294967294, %s1112_s14   ;;  %s1112_s14 = sphi %s1146_s14, %s19_s14   ;;  %s1108_s13 = sphi %s1144_s13, %s1406_s13   ;;  %s1104_s12 = sphi %s1142_s12, %s1405_s12   ;;  %s1100_s11 = sphi %s1140_s11, %s1404_s11   ;;  %s1096_s10 = sphi %s1138_s10, %s1403_s10   ;;  %s1092_s9 = sphi %s1136_s9, %s1402_s9  }
   0x8   : > { %p53_p0 = scmp.ne.s32.totalorder %s1096_s10, %s1092_s9  ;;  %p1170_p1 = scmp.eq.s32.totalorder %s724_s15, 0 }
   0x9   : > { %p1174_p2 = scmp.eq.s32.totalorder %s724_s15, 1  ;;  %p104_p3 = scmp.eq.s32.totalorder %s725_s16, 1 }
   0xa   : > { %p1180_p4 = por %p1170_p1, %p53_p0  ;;  %p726_p5 = scmp.ge.s32.totalorder %s1112_s14, 1 }
   0xb   : > { %p1185_p6 = por %p104_p3, %p53_p0  ;;  %p111_p7 = scmp.lt.s32.totalorder %s1112_s14, 3 }
   0xc   : > { %s122_s23 = sshll.u32 %s1381_s1, 4  ;;  %s1114_s25 = smov [#allocation6]   ;;  %s123_s23 = int_to_ptr.hbm [resolvable:$true] %s122_s23 }
   0xd   : > { %p1193_p8 = pnand %p726_p5, %p111_p7  ;;  %s124_s26 = sshll.u32 %s1114_s25, 4  ;;  %s125_s26 = int_to_ptr.vmem [resolvable:$true] %s124_s26 }
   0xe   : > { %p728_p11 = scmp.ge.s32.totalorder %s1112_s14, 2  ;;  %s1115_s27 = smov 128  }
   0xf   : > { %p895_p9 = pneg %p1193_p8  ;;  %s1116_s28 = smov 8  }
  0x10   : > { %s31_s29 = sadd.s32 1, %s1108_s13  ;;  %s40_s30 = sadd.s32 1, %s1100_s11 }
  0x11   : > { %p896_p10 = pnand %p895_p9, %p1170_p1  ;;  %p33_p12 = scmp.ge.s32.totalorder %s31_s29, 2 }
  0x12   : > { %p47_p13 = scmp.ne.s32.totalorder %s1100_s11, %s1096_s10  ;;  %p48_p0 = scmp.eq.s32.totalorder %s1112_s14, 0 }
  0x13   : > { %898 = dma.hbm_to_vmem [thread:$0]  (!%p896_p10), %s123_s23, 2048, %s125_s26, [#allocation7], %s1115_s27, %s1115_s27, %s1116_s28  }
  0x14   : > { %s1408_s29 = smov (%p33_p12, %s31_s29), 0  ;;  %p1209_p3 = por %p48_p0, %p47_p13 }
  0x15   : > { %p1215_p5 = por %p1174_p2, %p47_p13  ;;  %s35_s5 = ssub.s32 %s1108_s13, %s1408_s29 }
  0x16   : > { %p908_p7 = scmp.lt.s32.totalorder %s1112_s14, 2  ;;  %p38_p9 = scmp.eq.s32.totalorder %s35_s5, 0 }
  0x17   : > { %s138_s6 = sand.u32 1, %s1100_s11   ;;  %s837_s15 = sshll.u32 %s1108_s13, 6 }
  0x18   : > { %s729_s7 = sshll.u32 %s138_s6, 6  ;;  %s149_s22 = scalar_lea.hbm %s1380_s0, %s837_s15 }
  0x19   : > { %s1224_s8 = scalar_select %p38_p9, %s1100_s11, %s40_s30  }
  0x1a   : > { %s142_s23 = scalar_lea.vmem [#allocation3], %s729_s7  ;;  %s150_s18 = sshll.u32 %s149_s22, 4  ;;  %s151_s18 = int_to_ptr.hbm [resolvable:$true] %s150_s18 }
  0x1b   : > { %s152_s25 = sshll.u32 %s142_s23, 4  ;;  %p900_p2 = pnand %p908_p7, %p1209_p3  ;;  %s153_s25 = int_to_ptr.vmem [resolvable:$true] %s152_s25 }
  0x1c   : > { %s139_s26 = scalar_lea.sflag [#allocation4], %s138_s6  ;;  %s1117_s27 = smov 64  }
  0x1d   : > { %s1118_s28 = smov 4   ;;  %164 = sbr.rel (%p1193_p8) target bundleno = 640 (0x280), region = 28 }
  0x1e   : > { %902 = dma.hbm_to_vmem [thread:$0]  (!%p900_p2), %s151_s18, 1024, %s153_s25, %s139_s26, %s1117_s27, %s1117_s27, %s1118_s28  }
  0x1f   : > { %s1235_s30 = sand.u32 (!%p1193_p8), 1, %s1096_s10  }
  0x20   : > { %s733_s5 = sshll.u32 (!%p1193_p8), %s1235_s30, 6  ;;  %s167_s7 = scalar_lea.sflag (!%p1193_p8), [#allocation4], %s1235_s30 }
  0x21   : > { %s1239_s15 = scalar_lea.vmem (!%p1193_p8), [#allocation3], %s733_s5 }
  0x22   : > { %1079 = dma.done.wait (%p1180_p4), %s167_s7, 1024  }
  0x23   : > { %1081 = vsyncadd (%p1180_p4), %s167_s7, 4294966272 }
  0x24   : > { %1083 = dma.done.wait (%p1170_p1), [#allocation7], 2048  }
  0x25   : > { %1085 = vsyncadd (%p1170_p1), [#allocation7], 4294965248  ;;  %v826_v0 = vld [vmem:[#allocation6 + $0x70] sm:$0xf]  ;;  %v861_v1 = vld [vmem:[#allocation6 + $0x74] sm:$0xf0] }
  0x26   : > { %v860_v2 = vld [vmem:[#allocation6 + $0x74] sm:$0xf]  ;;  %v827_v3 = vor.u32 %v861_v1, %v826_v0  ;;  %v828_v4 = vld [vmem:[#allocation6 + $0x78] sm:$0xf0]  ;;  %v818_v5 = vld [vmem:[#allocation6 + $0x60] sm:$0xf] }
  0x27   : > { %v859_v6 = vld [vmem:[#allocation6 + $0x64] sm:$0xf0]  ;;  %v1249_v7 = vor.u32 %v860_v2, %v828_v4  ;;  %v858_v8 = vld [vmem:[#allocation6 + $0x64] sm:$0xf]  ;;  %v820_v9 = vld [vmem:[#allocation6 + $0x68] sm:$0xf0] }
  0x28   : > { %364 = vmatpush.bf16.msra.mxu0 %v827_v3  ;;  %v819_v10 = vor.u32 %v859_v6, %v818_v5  ;;  %863 = vmatpush.bf16.msra.mxu3 %v827_v3  ;;  %v1252_v11 = vor.u32 %v858_v8, %v820_v9  ;;  %v810_v12 = vld [vmem:[#allocation6 + $0x50] sm:$0xf]  ;;  %v857_v13 = vld [vmem:[#allocation6 + $0x54] sm:$0xf0]  ;;  %v856_v14 = vld [vmem:[#allocation6 + $0x54] sm:$0xf] }
  0x29   : > { %413 = vmatpush.bf16.msra.mxu1 %v1249_v7  ;;  %v812_v15 = vld [vmem:[#allocation6 + $0x58] sm:$0xf0]  ;;  %v811_v16 = vor.u32 %v857_v13, %v810_v12  ;;  %v802_v18 = vld [vmem:[#allocation6 + $0x40] sm:$0xf]  ;;  %v855_v19 = vld [vmem:[#allocation6 + $0x44] sm:$0xf0] }
  0x2a   : > { %v815_v17 = vor.u32 %v856_v14, %v812_v15  ;;  %v854_v20 = vld [vmem:[#allocation6 + $0x44] sm:$0xf]  ;;  %v804_v21 = vld [vmem:[#allocation6 + $0x48] sm:$0xf0]  ;;  %v803_v22 = vor.u32 %v855_v19, %v802_v18  ;;  %v794_v24 = vld [vmem:[#allocation6 + $0x30] sm:$0xf] }
  0x2b   : > { %v807_v23 = vor.u32 %v854_v20, %v804_v21  ;;  %v853_v25 = vld [vmem:[#allocation6 + $0x34] sm:$0xf0]  ;;  %v852_v26 = vld [vmem:[#allocation6 + $0x34] sm:$0xf]  ;;  %v796_v27 = vld [vmem:[#allocation6 + $0x38] sm:$0xf0] }
  0x2c   : > { %365 = vmatpush.bf16.msra.mxu0 %v819_v10  ;;  %864 = vmatpush.bf16.msra.mxu3 %v819_v10  ;;  %v795_v28 = vor.u32 %v853_v25, %v794_v24  ;;  %v799_v29 = vor.u32 %v852_v26, %v796_v27  ;;  %v786_v30 = vld [vmem:[#allocation6 + $0x20] sm:$0xf]  ;;  %v851_v31 = vld [vmem:[#allocation6 + $0x24] sm:$0xf0]  ;;  %v850_v32 = vld [vmem:[#allocation6 + $0x24] sm:$0xf] }
  0x2d   : > { %414 = vmatpush.bf16.msra.mxu1 %v1252_v11  ;;  %v788_v33 = vld [vmem:[#allocation6 + $0x28] sm:$0xf0]  ;;  %v787_v34 = vor.u32 %v851_v31, %v786_v30  ;;  %v778_v36 = vld [vmem:[#allocation6 + $0x10] sm:$0xf]  ;;  %v849_v37 = vld [vmem:[#allocation6 + $0x14] sm:$0xf0] }
  0x2e   : > { %v791_v35 = vor.u32 %v850_v32, %v788_v33  ;;  %v848_v38 = vld [vmem:[#allocation6 + $0x14] sm:$0xf]  ;;  %v780_v39 = vld [vmem:[#allocation6 + $0x18] sm:$0xf0]  ;;  %v779_v40 = vor.u32 %v849_v37, %v778_v36  ;;  %v770_v42 = vld [vmem:[#allocation6] sm:$0xf] }
  0x2f   : > { %v783_v41 = vor.u32 %v848_v38, %v780_v39  ;;  %v847_v43 = vld [vmem:[#allocation6 + $0x4] sm:$0xf0]  ;;  %v846_v44 = vld [vmem:[#allocation6 + $0x4] sm:$0xf]  ;;  %v772_v45 = vld [vmem:[#allocation6 + $0x8] sm:$0xf0] }
  0x30   : > { %366 = vmatpush.bf16.msra.mxu0 %v811_v16  ;;  %865 = vmatpush.bf16.msra.mxu3 %v811_v16  ;;  %v771_v46 = vor.u32 %v847_v43, %v770_v42  ;;  %v775_v47 = vor.u32 %v846_v44, %v772_v45  ;;  %v838_v48 = vld [vmem:[%s1239_s15] sm:$0xff]  ;;  %v844_v49 = vld [vmem:[%s1239_s15 + $0x30] sm:$0xff]  ;;  %v839_v50 = vld [vmem:[%s1239_s15 + $0x8] sm:$0xff]  ;;  %s735_s17 = sshll.u32 %s1235_s30, 4  ;;  %s862_s19 = sshll.u32 %s1104_s12, 4 }
  0x31   : > { %415 = vmatpush.bf16.msra.mxu1 %v815_v17  ;;  %v845_v51 = vld [vmem:[%s1239_s15 + $0x38] sm:$0xff]  ;;  %v840_v52 = vld [vmem:[%s1239_s15 + $0x10] sm:$0xff]  ;;  %v842_v54 = vld [vmem:[%s1239_s15 + $0x20] sm:$0xff]  ;;  %s626_s6 = scalar_lea.hbm %s1382_s2, %s862_s19  ;;  %s196_s16 = scalar_lea.vmem [#allocation8], %s735_s17 }
  0x32   : > { %v841_v53 = vld [vmem:[%s1239_s15 + $0x18] sm:$0xff]  ;;  %v843_v55 = vld [vmem:[%s1239_s15 + $0x28] sm:$0xff]  ;;  %s627_s12 = sshll.u32 %s196_s16, 4  ;;  %s629_s21 = sshll.u32 %s626_s6, 4  ;;  %s628_s12 = int_to_ptr.vmem [resolvable:$true] %s627_s12  ;;  %s630_s21 = int_to_ptr.hbm [resolvable:$true] %s629_s21 }
  0x33   : > { %s615_s22 = scalar_lea.sflag [#allocation5], %s1235_s30  ;;  %s1040_s23 = sshra.s32 %s630_s21, 4  ;;  %s1041_s23 = int_to_ptr.hbm [resolvable:$true] %s1040_s23 }
  0x34   : > { %367 = vmatpush.bf16.msra.mxu0 %v803_v22  ;;  %866 = vmatpush.bf16.msra.mxu3 %v803_v22  ;;  %s1042_s25 = scalar_lea.hbm %s1041_s23, 16  ;;  %s1046_s27 = scalar_lea.hbm %s1382_s2, 32 }
  0x35   : > { %416 = vmatpush.bf16.msra.mxu1 %v807_v23  ;;  %p1043_p1 = scmp.ne.s32.totalorder %s1041_s23, %s1042_s25  ;;  %p1047_p10 = scmp.lt.s32.totalorder %s1041_s23, %s1382_s2 }
  0x36   : > { %p1048_p12 = scmp.lt.s32.totalorder %s1046_s27, %s1042_s25 }
  0x37   : > { %p1044_p4 = pnand %p1043_p1, %p1215_p5 }
  0x38   : > { %368 = vmatpush.bf16.msra.mxu0 %v795_v28  ;;  %867 = vmatpush.bf16.msra.mxu3 %v795_v28  ;;  %p1049_p13 = por %p1048_p12, %p1047_p10 }
  0x39   : > { %417 = vmatpush.bf16.msra.mxu1 %v799_v29  ;;  %p1045_p8 = pneg %p1044_p4 }
  0x3b   : > { %p1050_p0 = pnand %p1049_p13, %p1045_p8 }
  0x3c   : > { %369 = vmatpush.bf16.msra.mxu0 %v787_v34  ;;  %868 = vmatpush.bf16.msra.mxu3 %v787_v34 }
  0x3d   : > { %418 = vmatpush.bf16.msra.mxu1 %v791_v35 }
  0x40   : > { %370 = vmatpush.bf16.msra.mxu0 %v779_v40  ;;  %869 = vmatpush.bf16.msra.mxu3 %v779_v40 }
  0x41   : > { %419 = vmatpush.bf16.msra.mxu1 %v783_v41 }
  0x44   : > { %371 = vmatpush.bf16.msra.mxu0 %v771_v46  ;;  %870 = vmatpush.bf16.msra.mxu3 %v771_v46 }
  0x45   : > { %420 = vmatpush.bf16.msra.mxu1 %v775_v47 }
  0x47   : > { %372 = vmatmul.bf16.vlgmr.msra.gmra.mxu0 %v838_v48  ;;  %402 = vmatmul.bf16.vlgmr.msra.gmra.mxu3 %v844_v49 }
  0x48   : > { %871 = vmatpush.bf16.msrb.mxu3 %v1249_v7  ;;  %421 = vmatmul.bf16.vlgmr.msra.gmra.mxu1 %v838_v48 }
  0x4c   : > { %872 = vmatpush.bf16.msrb.mxu3 %v1252_v11 }
  0x50   : > { %873 = vmatpush.bf16.msrb.mxu3 %v815_v17 }
  0x54   : > { %874 = vmatpush.bf16.msrb.mxu3 %v807_v23 }
  0x57   : > { %377 = vmatmul.bf16.gmra.mxu0 %v839_v50  ;;  %407 = vmatmul.bf16.gmra.mxu3 %v845_v51 }
  0x58   : > { %875 = vmatpush.bf16.msrb.mxu3 %v799_v29  ;;  %426 = vmatmul.bf16.gmra.mxu1 %v839_v50 }
  0x5c   : > { %876 = vmatpush.bf16.msrb.mxu3 %v791_v35 }
  0x60   : > { %877 = vmatpush.bf16.msrb.mxu3 %v783_v41 }
  0x64   : > { %878 = vmatpush.bf16.msrb.mxu3 %v775_v47 }
  0x67   : > { %382 = vmatmul.bf16.gmra.mxu0 %v840_v52  ;;  %451 = vmatmul.bf16.vlgmr.msrb.gmra.mxu3 %v844_v49 }
  0x68   : > { %431 = vmatmul.bf16.gmra.mxu1 %v840_v52 }
  0x77   : > { %387 = vmatmul.bf16.gmra.mxu0 %v841_v53  ;;  %456 = vmatmul.bf16.gmra.mxu3 %v845_v51 }
  0x78   : > { %436 = vmatmul.bf16.gmra.mxu1 %v841_v53 }
  0x87   : > { %392 = vmatmul.bf16.gmra.mxu0 %v842_v54 }
  0x88   : > { %441 = vmatmul.bf16.gmra.mxu1 %v842_v54 }
  0x97   : > { %397 = vmatmul.bf16.gmra.mxu0 %v843_v55 }
  0x98   : > { %446 = vmatmul.bf16.gmra.mxu1 %v843_v55 }
  0xc4   : > { %v373_v56 = vpop.f32.mrf.mxu0 }
  0xc5   : > { %v422_v57 = vpop.f32.mrf.mxu1 }
  0xca   : > { %v403_v58 = vpop.f32.mrf.mxu3 }
  0xcc   : > { %v375_v59 = vpop.f32.mrf.mxu0 }
  0xcd   : > { %v1265_v60 = vpack.c.bf16 %v375_v59, %v373_v56  ;;  %v424_v61 = vpop.f32.mrf.mxu1 }
  0xce   : > { %v470_v62 = vpack.c.bf16 %v424_v61, %v422_v57  ;;  %v543_v57 = vlaneseq }
  0xd0   : > { %478 = vxpose.xlu0.c.b16.start [1/8] %v470_v62, 128 }
  0xd2   : > { %v405_v63 = vpop.f32.mrf.mxu3 }
  0xd3   : > { %v468_v11 = vpack.c.bf16 %v405_v63, %v403_v58  ;;  %v1269_v58 = vand.u32 127, %v543_v57 }
  0xd4   : > { %v378_v0 = vpop.f32.mrf.mxu0 }
  0xd5   : > { %v427_v1 = vpop.f32.mrf.mxu1  ;;  %vm552_vm0 = vcmp.ge.s32.totalorder %v1269_v58, 16  ;;  %vm553_vm1 = vcmp.lt.s32.totalorder %v1269_v58, 32  ;;  %vm559_vm2 = vcmp.ge.s32.totalorder %v1269_v58, 32  ;;  %vm560_vm3 = vcmp.lt.s32.totalorder %v1269_v58, 48 }
  0xd6   : > { %vm546_vm4 = vcmp.lt.s32.totalorder %v1269_v58, 16  ;;  %vm1276_vm5 = vmand %vm552_vm0, %vm553_vm1  ;;  %vm566_vm6 = vcmp.ge.s32.totalorder %v1269_v58, 48  ;;  %vm567_vm7 = vcmp.lt.s32.totalorder %v1269_v58, 64  ;;  %vm573_vm9 = vcmp.ge.s32.totalorder %v1269_v58, 64 }
  0xd7   : > { %vm1282_vm8 = vmand %vm559_vm2, %vm560_vm3  ;;  %vm574_vm10 = vcmp.lt.s32.totalorder %v1269_v58, 80  ;;  %vm580_vm12 = vcmp.ge.s32.totalorder %v1269_v58, 80  ;;  %vm581_vm13 = vcmp.lt.s32.totalorder %v1269_v58, 96  ;;  %vm587_vm15 = vcmp.ge.s32.totalorder %v1269_v58, 96 }
  0xd8   : > { %vm1292_vm11 = vmand %vm566_vm6, %vm567_vm7  ;;  %vm588_vm0 = vcmp.lt.s32.totalorder %v1269_v58, 112  ;;  %vm594_vm3 = vcmp.ge.s32.totalorder %v1269_v58, 112 }
  0xd9   : > { %vm1300_vm14 = vmand %vm573_vm9, %vm574_vm10 }
  0xda   : > { %v408_v2 = vpop.f32.mrf.mxu3  ;;  %vm1308_vm1 = vmand %vm580_vm12, %vm581_vm13 }
  0xdb   : > { %vm1314_vm2 = vmand %vm587_vm15, %vm588_vm0 }
  0xdc   : > { %v380_v3 = vpop.f32.mrf.mxu0 }
  0xdd   : > { %v463_v4 = vpack.c.bf16 %v380_v3, %v378_v0  ;;  %v429_v5 = vpop.f32.mrf.mxu1 }
  0xde   : > { %v471_v6 = vpack.c.bf16 %v429_v5, %v427_v1 }
  0xe0   : > { %479 = vxpose.xlu0.c.b16.cont [2/8] %v471_v6, 128 }
  0xe2   : > { %v410_v7 = vpop.f32.mrf.mxu3 }
  0xe3   : > { %v469_v8 = vpack.c.bf16 %v410_v7, %v408_v2 }
  0xe4   : > { %v383_v9 = vpop.f32.mrf.mxu0 }
  0xe5   : > { %v432_v10 = vpop.f32.mrf.mxu1  ;;  %494 = vmatpush.bf16.msra.mxu2 %v469_v8  ;;  %879 = vmatpush.bf16.msra.mxu3 %v469_v8 }
  0xe9   : > { %495 = vmatpush.bf16.msra.mxu2 %v468_v11  ;;  %880 = vmatpush.bf16.msra.mxu3 %v468_v11 }
  0xea   : > { %v452_v30 = vpop.f32.mrf.mxu3 }
  0xec   : > { %v385_v12 = vpop.f32.mrf.mxu0 }
  0xed   : > { %v434_v13 = vpop.f32.mrf.mxu1  ;;  %v464_v34 = vpack.c.bf16 %v385_v12, %v383_v9 }
  0xee   : > { %v472_v14 = vpack.c.bf16 %v434_v13, %v432_v10 }
  0xf0   : > { %480 = vxpose.xlu0.c.b16.cont [3/8] %v472_v14, 128 }
  0xf2   : > { %v454_v35 = vpop.f32.mrf.mxu3 }
  0xf3   : > { %v476_v36 = vpack.c.bf16 %v454_v35, %v452_v30 }
  0xf4   : > { %v388_v15 = vpop.f32.mrf.mxu0 }
  0xf5   : > { %v437_v16 = vpop.f32.mrf.mxu1 }
  0xfa   : > { %v457_v37 = vpop.f32.mrf.mxu3 }
  0xfc   : > { %v390_v17 = vpop.f32.mrf.mxu0 }
  0xfd   : > { %v439_v18 = vpop.f32.mrf.mxu1  ;;  %v465_v33 = vpack.c.bf16 %v390_v17, %v388_v15 }
  0xfe   : > { %v473_v19 = vpack.c.bf16 %v439_v18, %v437_v16 }
 0x100   : > { %481 = vxpose.xlu0.c.b16.cont [4/8] %v473_v19, 128 }
 0x102   : > { %v459_v38 = vpop.f32.mrf.mxu3 }
 0x103   : > { %v477_v39 = vpack.c.bf16 %v459_v38, %v457_v37 }
 0x104   : > { %v393_v20 = vpop.f32.mrf.mxu0 }
 0x105   : > { %v442_v21 = vpop.f32.mrf.mxu1 }
 0x10c   : > { %v395_v22 = vpop.f32.mrf.mxu0 }
 0x10d   : > { %v444_v23 = vpop.f32.mrf.mxu1  ;;  %v466_v32 = vpack.c.bf16 %v395_v22, %v393_v20 }
 0x10e   : > { %v474_v24 = vpack.c.bf16 %v444_v23, %v442_v21 }
 0x110   : > { %482 = vxpose.xlu0.c.b16.cont [5/8] %v474_v24, 128 }
 0x114   : > { %v398_v25 = vpop.f32.mrf.mxu0 }
 0x115   : > { %v447_v26 = vpop.f32.mrf.mxu1 }
 0x11c   : > { %v400_v27 = vpop.f32.mrf.mxu0 }
 0x11d   : > { %v467_v28 = vpack.c.bf16 %v400_v27, %v398_v25  ;;  %v449_v29 = vpop.f32.mrf.mxu1 }
 0x11e   : > { %v475_v31 = vpack.c.bf16 %v449_v29, %v447_v26 }
 0x11f   : > { %496 = vmatpush.bf16.msra.mxu2 %v467_v28  ;;  %881 = vmatpush.bf16.msra.mxu3 %v467_v28 }
 0x120   : > { %483 = vxpose.xlu0.c.b16.cont [6/8] %v475_v31, 128 }
 0x123   : > { %497 = vmatpush.bf16.msra.mxu2 %v466_v32  ;;  %882 = vmatpush.bf16.msra.mxu3 %v466_v32 }
 0x127   : > { %498 = vmatpush.bf16.msra.mxu2 %v465_v33  ;;  %883 = vmatpush.bf16.msra.mxu3 %v465_v33 }
 0x12b   : > { %499 = vmatpush.bf16.msra.mxu2 %v464_v34  ;;  %884 = vmatpush.bf16.msra.mxu3 %v464_v34 }
 0x12f   : > { %500 = vmatpush.bf16.msra.mxu2 %v463_v4  ;;  %885 = vmatpush.bf16.msra.mxu3 %v463_v4 }
 0x130   : > { %484 = vxpose.xlu0.c.b16.cont [7/8] %v476_v36, 128 }
 0x133   : > { %501 = vmatpush.bf16.msra.mxu2 %v1265_v60  ;;  %886 = vmatpush.bf16.msra.mxu3 %v1265_v60 }
 0x140   : > { %485 = vxpose.xlu0.c.b16.end [8/8] %v477_v39, 128 }
 0x17c   : > { %v486_v40 = vpop.trf.xlu0 }
 0x17d   : > { %502 = vmatmul.bf16.vlgmr.msra.gmra.mxu2 %v486_v40 }
 0x18c   : > { %v487_v41 = vpop.trf.xlu0 }
 0x18d   : > { %507 = vmatmul.bf16.gmra.mxu2 %v487_v41 }
 0x19c   : > { %v488_v42 = vpop.trf.xlu0 }
 0x19d   : > { %512 = vmatmul.bf16.gmra.mxu2 %v488_v42 }
 0x1ac   : > { %v489_v43 = vpop.trf.xlu0 }
 0x1ad   : > { %517 = vmatmul.bf16.gmra.mxu2 %v489_v43 }
 0x1bc   : > { %v490_v44 = vpop.trf.xlu0 }
 0x1bd   : > { %522 = vmatmul.bf16.gmra.mxu2 %v490_v44 }
 0x1cc   : > { %v491_v45 = vpop.trf.xlu0 }
 0x1cd   : > { %527 = vmatmul.bf16.gmra.mxu2 %v491_v45 }
 0x1dc   : > { %v492_v46 = vpop.trf.xlu0 }
 0x1dd   : > { %532 = vmatmul.bf16.vlgmr.msra.gmra.mxu3 %v492_v46 }
 0x1ec   : > { %v493_v47 = vpop.trf.xlu0 }
 0x1ed   : > { %537 = vmatmul.bf16.gmra.mxu3 %v493_v47 }
 0x200   : > { %v503_v48 = vpop.f32.mrf.mxu2 }
 0x201   : > { %v548_v63 = vsel %vm546_vm4, %v503_v48, 0.0 }
 0x208   : > { %v505_v49 = vpop.f32.mrf.mxu2 }
 0x209   : > { %v549_v13 = vsel %vm546_vm4, %v505_v49, 0.0 }
 0x210   : > { %v508_v50 = vpop.f32.mrf.mxu2 }
 0x211   : > { %v555_v0 = vsel %vm1276_vm5, %v508_v50, 0.0 }
 0x212   : > { %v557_v3 = vadd.f32 %v555_v0, %v548_v63 }
 0x218   : > { %v510_v51 = vpop.f32.mrf.mxu2 }
 0x219   : > { %v556_v14 = vsel %vm1276_vm5, %v510_v51, 0.0 }
 0x21a   : > { %v558_v19 = vadd.f32 %v556_v14, %v549_v13 }
 0x220   : > { %v513_v52 = vpop.f32.mrf.mxu2 }
 0x221   : > { %v562_v2 = vsel %vm1282_vm8, %v513_v52, 0.0 }
 0x222   : > { %v564_v7 = vadd.f32 %v562_v2, %v557_v3 }
 0x228   : > { %v515_v53 = vpop.f32.mrf.mxu2 }
 0x229   : > { %v563_v17 = vsel %vm1282_vm8, %v515_v53, 0.0 }
 0x22a   : > { %v565_v22 = vadd.f32 %v563_v17, %v558_v19 }
 0x230   : > { %v518_v54 = vpop.f32.mrf.mxu2 }
 0x231   : > { %v569_v6 = vsel %vm1292_vm11, %v518_v54, 0.0 }
 0x232   : > { %v571_v11 = vadd.f32 %v569_v6, %v564_v7 }
 0x238   : > { %v520_v55 = vpop.f32.mrf.mxu2 }
 0x239   : > { %v570_v21 = vsel %vm1292_vm11, %v520_v55, 0.0 }
 0x23a   : > { %v572_v28 = vadd.f32 %v570_v21, %v565_v22 }
 0x240   : > { %v523_v56 = vpop.f32.mrf.mxu2 }
 0x241   : > { %v576_v10 = vsel %vm1300_vm14, %v523_v56, 0.0 }
 0x242   : > { %v578_v16 = vadd.f32 %v576_v10, %v571_v11 }
 0x248   : > { %v525_v59 = vpop.f32.mrf.mxu2 }
 0x249   : > { %v577_v26 = vsel %vm1300_vm14, %v525_v59, 0.0 }
 0x24a   : > { %v579_v31 = vadd.f32 %v577_v26, %v572_v28 }
 0x250   : > { %v528_v5 = vpop.f32.mrf.mxu2 }
 0x251   : > { %v583_v15 = vsel %vm1308_vm1, %v528_v5, 0.0 }
 0x252   : > { %v585_v20 = vadd.f32 %v583_v15, %v578_v16 }
 0x258   : > { %v530_v23 = vpop.f32.mrf.mxu2 }
 0x259   : > { %v584_v30 = vsel %vm1308_vm1, %v530_v23, 0.0 }
 0x25a   : > { %v586_v33 = vadd.f32 %v584_v30, %v579_v31 }
 0x260   : > { %v533_v61 = vpop.f32.mrf.mxu3 }
 0x261   : > { %v590_v18 = vsel %vm1314_vm2, %v533_v61, 0.0 }
 0x262   : > { %v592_v24 = vadd.f32 %v590_v18, %v585_v20 }
 0x268   : > { %v535_v9 = vpop.f32.mrf.mxu3 }
 0x269   : > { %v591_v32 = vsel %vm1314_vm2, %v535_v9, 0.0 }
 0x26a   : > { %v593_v34 = vadd.f32 %v591_v32, %v586_v33 }
 0x270   : > { %v538_v25 = vpop.f32.mrf.mxu3 }
 0x271   : > { %v597_v27 = vsel %vm594_vm3, %v538_v25, 0.0 }
 0x272   : > { %v599_v29 = vadd.f32 %v597_v27, %v592_v24 }
 0x274   : > { %612 = vst [vmem:[%s196_s16] sm:$0xff] %v599_v29 }
 0x278   : > { %v540_v35 = vpop.f32.mrf.mxu3 }
 0x279   : > { %v598_v36 = vsel %vm594_vm3, %v540_v35, 0.0 }
 0x27a   : > { %v600_v37 = vadd.f32 %v598_v36, %v593_v34 }
 0x27c   : > { %613 = vst [vmem:[%s196_s16 + $0x8] sm:$0xff] %v600_v37 }
 0x27d   : > { %1053 = shalt.err (!%p1050_p0)
}
 0x27e   : > { %s1119_s30 = smov 128   ;;  %s1120_s7 = smov 8  }
 0x27f   : > { %893 = dma.vmem_to_hbm [thread:$0]  (%p1215_p5), %s628_s12, 256, %s630_s21, %s615_s22, %s1119_s30, %s1119_s30, %s1120_s7  }
 0x280 PF: > { %s644_s15 = sand.u32 1, %s1092_s9   ;;  %p904_p3 = pnand %p728_p11, %p1185_p6 }
 0x281   : > { %s645_s17 = scalar_lea.sflag [#allocation5], %s644_s15 }
 0x282   : > { %p905_p7 = pneg %p904_p3 }
 0x284   : > { %1087 = dma.done.wait (%p905_p7), %s645_s17, 256  }
 0x285   : > { %1089 = vsyncadd (%p905_p7), %s645_s17, 4294967040  ;;  %s19_s14 = sadd.s32 1, %s1112_s14   ;;  %s1402_s9 = smov %s1096_s10 }
 0x286   : > { %p16_p9 = scmp.ge.s32.totalorder %s19_s14, 4   ;;  %s1403_s10 = smov %s1100_s11 }
 0x287   : > { %s1404_s11 = smov %s1224_s8  ;;  %s1405_s12 = smov %s1108_s13 }
 0x288   : > { %s1406_s13 = smov %s1408_s29  ;;  %18 = sbr.rel (!%p16_p9) target bundleno = 7 (0x7), region = 85 }
 0x28d   :  { %651 = vsyncpa [#allocation4], 1 }
 0x28e   :  { %653 = vsyncpa [#allocation4 + $0x1], 1 }
 0x28f   :  { %654 = vsyncpa [#allocation7], 1 }
 0x290   :  { %655 = vsyncpa [#allocation5], 1 }
 0x291   :  { %657 = vsyncpa [#allocation5 + $0x1], 1 }

</bundles_post_ra>
